<compile_context>
chip_gen: v5e
topology: v5e:2x2
jax: 0.10.0
libtpu: 0.0.40
codegen_flags: <defaults>
</compile_context>

<pallas_src>
import functools

import jax
import jax.numpy as jnp
from jax.experimental import pallas as pl
from jax.experimental.pallas import tpu as pltpu

# tanh-GELU constants (hoisted form: c1*(y + 0.044715*y^3) == y*(C1 + C2*y^2)).
_C1 = 0.7978845608028654
_C2 = 0.044715 * _C1


def _linear_gelu_kernel(x_ref, w_ref, b_ref, o_ref, *, sub):
    """x_ref: (K, Ts, 128) VMEM; w_ref: (K, N) SMEM; b_ref: (N,) SMEM;
    o_ref: (N, Ts, 128) VMEM.  The flattened M axis lives on (Ts, 128)."""
    kk = x_ref.shape[0]            # 3
    nn = o_ref.shape[0]            # 10
    num_sub = x_ref.shape[1] // sub

    # Hoist the SMEM scalar reads out of the sub-tile loop.
    wv = [[w_ref[k, n] for k in range(kk)] for n in range(nn)]
    bv = [b_ref[n] for n in range(nn)]

    # Inner sub-tile loop (fully unrolled, static slices): load K sub-tiles,
    # produce and store the N outputs, then move on -> bounded vreg pressure
    # even when the BlockSpec tile is 512 sublanes.
    for j in range(num_sub):
        rows = slice(j * sub, (j + 1) * sub)
        xs = [x_ref[k, rows, :] for k in range(kk)]        # K x (sub, 128)
        for n in range(nn):
            # Linear: y[m] = sum_k w[k,n] * x[k,m] + b[n]  (pure VPU FMAs).
            y = xs[0] * wv[n][0] + bv[n]
            for k in range(1, kk):
                y = y + xs[k] * wv[n][k]
            # tanh-GELU; jnp.tanh lowers to the (otherwise idle) EUP slot.
            t = jnp.tanh(y * (_C1 + _C2 * (y * y)))
            # .astype is a no-op for f32 I/O; kept for non-f32 output dtypes.
            o_ref[n, rows, :] = ((0.5 * y) * (t + 1.0)).astype(o_ref.dtype)


def _round_up(a, m):
    return (a + m - 1) // m * m


def model_forward(x, w, b, *, lane_dense_output=False):
    """x: (B, C, H, K) with K == w.shape[0], C % 4 == 0.

    Returns tanh-GELU(Linear(x))'s first channel chunk:
      * default: (B, C//4, H, N), matching the PyTorch module, or
      * lane_dense_output=True: (N, B*(C//4)*H) channel-major, skipping the
        epilogue un-transpose for consumers that can fuse it.
    """
    B, C, H, K = x.shape
    assert C % 4 == 0 and K == w.shape[0]
    N = w.shape[1]
    Cq = C // 4
    M = B * Cq * H

    # --- Tile selection -----------------------------------------------------
    SUB = 32                                        # inner sub-tile sublanes
    mr0 = _round_up(max((M + 127) // 128, 1), 8)    # sublane-rows needed
    if mr0 <= SUB:
        tsub = mr0                                  # tiny problem: one block
    else:
        # >=2 grid steps (v7x megacore), blocks capped at 512 sublanes so the
        # double-buffered VMEM (~6.8 MiB) fits every generation's default
        # scoped limit; 512 is past the measured DMA-amortization knee.
        tsub = min(512, _round_up(max(mr0 // 2, SUB), SUB))
    mr = _round_up(mr0, tsub)
    m_pad = mr * 128
    sub = min(SUB, tsub)                            # divides tsub by construction

    # --- Lane-dense relayout of the first channel chunk ---------------------
    # (B, Cq, H, K) -> (K, M) -> pad -> (K, Mr, 128).  XLA fuses slice,
    # transpose and pad into one copy that reads only C/4 of x (the slice copy
    # is needed anyway, so the transpose is free on the read side).
    xt = x[:, :Cq].reshape(M, K).T
    xt = jnp.pad(xt, ((0, 0), (0, m_pad - M))).reshape(K, mr, 128)

    out_t = pl.pallas_call(
        functools.partial(_linear_gelu_kernel, sub=sub),
        out_shape=jax.ShapeDtypeStruct((N, mr, 128), x.dtype),
        grid=(mr // tsub,),
        in_specs=[
            pl.BlockSpec((K, tsub, 128), lambda i: (0, i, 0)),
            pl.BlockSpec(memory_space=pltpu.MemorySpace.SMEM),   # w (K, N)
            pl.BlockSpec(memory_space=pltpu.MemorySpace.SMEM),   # b (N,)
        ],
        out_specs=pl.BlockSpec((N, tsub, 128), lambda i: (0, i, 0)),
        compiler_params=pltpu.CompilerParams(
            dimension_semantics=("parallel",)),
    )(xt, w, b)

    out_nm = out_t.reshape(N, m_pad)[:, :M]
    if lane_dense_output:
        return out_nm                               # (N, M): no epilogue pass
    # Back to the PyTorch layout: (N, M) -> (M, N) -> (B, Cq, H, N).
    return out_nm.T.reshape(B, Cq, H, N)


def _ref_forward(x, w, b):
    y = jnp.einsum("bchk,kn->bchn", x, w) + b
    v1 = y[:, : y.shape[1] // 4]
    v5 = v1 * 0.5
    v6 = v1 + v1 * v1 * v1 * 0.044715
    v7 = v6 * 0.7978845608028654
    v8 = jnp.tanh(v7)
    return v5 * (v8 + 1.0)


if __name__ == "__main__":
    key = jax.random.PRNGKey(0)
    kx, kw, kb = jax.random.split(key, 3)

    # Small shapes consistent with the module: Linear(3, 10) on the last axis,
    # chunk(4) along dim 1 -> dim 1 divisible by 4.
    B, C, H, K_in, N_out = 2, 8, 16, 3, 10
    x = jax.random.normal(kx, (B, C, H, K_in), dtype=jnp.float32)

    # Deterministic Linear(3, 10) params (PyTorch-style uniform init bound).
    bound = 1.0 / (K_in ** 0.5)
    w = jax.random.uniform(kw, (K_in, N_out), jnp.float32, -bound, bound)
    b = jax.random.uniform(kb, (N_out,), jnp.float32, -bound, bound)

    fwd = jax.jit(model_forward)

    out = fwd(x, w, b)
    jax.block_until_ready(out)
    ref = _ref_forward(x, w, b)
    assert out.shape == (B, C // 4, H, N_out)
    assert jnp.allclose(out, ref, atol=1e-5, rtol=1e-5)

    # Larger M: exercises the multi-step grid (2 steps of 256 sublanes) and
    # the inner sub-tile loop (8 sub-tiles of 32 sublanes).
    B2, C2, H2 = 1, 4, 65536
    x2 = jax.random.normal(kx, (B2, C2, H2, K_in), dtype=jnp.float32)
    out2 = fwd(x2, w, b)
    jax.block_until_ready(out2)
    ref2 = _ref_forward(x2, w, b)
    assert out2.shape == (B2, C2 // 4, H2, N_out)
    assert jnp.allclose(out2, ref2, atol=1e-5, rtol=1e-5)

    print("KERNEL_OK")
</pallas_src>

<mosaic_0001>
module attributes {stable_mosaic.version = 11 : i64} {
  func.func @_linear_gelu_kernel(%arg0: i32, %arg1: memref<3x8x128xf32, #tpu.memory_space<vmem>>, %arg2: memref<3x10xf32, #tpu.memory_space<smem>>, %arg3: memref<10xf32, #tpu.memory_space<smem>>, %arg4: memref<10x8x128xf32, #tpu.memory_space<vmem>>) attributes {dimension_semantics = [#tpu.dimension_semantics<parallel>], iteration_bounds = array<i64: 1>, scalar_prefetch = 0 : i64, scratch_operands = 0 : i64, tpu.core_type = #tpu.core_type<tc>, window_params = [{transform_indices = @transform_0, window_bounds = array<i64: 3, 8, 128>}, {transform_indices = @transform_1, window_bounds = array<i64: 3, 10>}, {transform_indices = @transform_2, window_bounds = array<i64: 10>}, {transform_indices = @transform_3, window_bounds = array<i64: 10, 8, 128>}]} {
    %c0 = arith.constant 0 : index
    %c0_0 = arith.constant 0 : index
    %0 = memref.load %arg2[%c0, %c0_0] : memref<3x10xf32, #tpu.memory_space<smem>>
    %c1 = arith.constant 1 : index
    %c0_1 = arith.constant 0 : index
    %1 = memref.load %arg2[%c1, %c0_1] : memref<3x10xf32, #tpu.memory_space<smem>>
    %c2 = arith.constant 2 : index
    %c0_2 = arith.constant 0 : index
    %2 = memref.load %arg2[%c2, %c0_2] : memref<3x10xf32, #tpu.memory_space<smem>>
    %c0_3 = arith.constant 0 : index
    %c1_4 = arith.constant 1 : index
    %3 = memref.load %arg2[%c0_3, %c1_4] : memref<3x10xf32, #tpu.memory_space<smem>>
    %c1_5 = arith.constant 1 : index
    %c1_6 = arith.constant 1 : index
    %4 = memref.load %arg2[%c1_5, %c1_6] : memref<3x10xf32, #tpu.memory_space<smem>>
    %c2_7 = arith.constant 2 : index
    %c1_8 = arith.constant 1 : index
    %5 = memref.load %arg2[%c2_7, %c1_8] : memref<3x10xf32, #tpu.memory_space<smem>>
    %c0_9 = arith.constant 0 : index
    %c2_10 = arith.constant 2 : index
    %6 = memref.load %arg2[%c0_9, %c2_10] : memref<3x10xf32, #tpu.memory_space<smem>>
    %c1_11 = arith.constant 1 : index
    %c2_12 = arith.constant 2 : index
    %7 = memref.load %arg2[%c1_11, %c2_12] : memref<3x10xf32, #tpu.memory_space<smem>>
    %c2_13 = arith.constant 2 : index
    %c2_14 = arith.constant 2 : index
    %8 = memref.load %arg2[%c2_13, %c2_14] : memref<3x10xf32, #tpu.memory_space<smem>>
    %c0_15 = arith.constant 0 : index
    %c3 = arith.constant 3 : index
    %9 = memref.load %arg2[%c0_15, %c3] : memref<3x10xf32, #tpu.memory_space<smem>>
    %c1_16 = arith.constant 1 : index
    %c3_17 = arith.constant 3 : index
    %10 = memref.load %arg2[%c1_16, %c3_17] : memref<3x10xf32, #tpu.memory_space<smem>>
    %c2_18 = arith.constant 2 : index
    %c3_19 = arith.constant 3 : index
    %11 = memref.load %arg2[%c2_18, %c3_19] : memref<3x10xf32, #tpu.memory_space<smem>>
    %c0_20 = arith.constant 0 : index
    %c4 = arith.constant 4 : index
    %12 = memref.load %arg2[%c0_20, %c4] : memref<3x10xf32, #tpu.memory_space<smem>>
    %c1_21 = arith.constant 1 : index
    %c4_22 = arith.constant 4 : index
    %13 = memref.load %arg2[%c1_21, %c4_22] : memref<3x10xf32, #tpu.memory_space<smem>>
    %c2_23 = arith.constant 2 : index
    %c4_24 = arith.constant 4 : index
    %14 = memref.load %arg2[%c2_23, %c4_24] : memref<3x10xf32, #tpu.memory_space<smem>>
    %c0_25 = arith.constant 0 : index
    %c5 = arith.constant 5 : index
    %15 = memref.load %arg2[%c0_25, %c5] : memref<3x10xf32, #tpu.memory_space<smem>>
    %c1_26 = arith.constant 1 : index
    %c5_27 = arith.constant 5 : index
    %16 = memref.load %arg2[%c1_26, %c5_27] : memref<3x10xf32, #tpu.memory_space<smem>>
    %c2_28 = arith.constant 2 : index
    %c5_29 = arith.constant 5 : index
    %17 = memref.load %arg2[%c2_28, %c5_29] : memref<3x10xf32, #tpu.memory_space<smem>>
    %c0_30 = arith.constant 0 : index
    %c6 = arith.constant 6 : index
    %18 = memref.load %arg2[%c0_30, %c6] : memref<3x10xf32, #tpu.memory_space<smem>>
    %c1_31 = arith.constant 1 : index
    %c6_32 = arith.constant 6 : index
    %19 = memref.load %arg2[%c1_31, %c6_32] : memref<3x10xf32, #tpu.memory_space<smem>>
    %c2_33 = arith.constant 2 : index
    %c6_34 = arith.constant 6 : index
    %20 = memref.load %arg2[%c2_33, %c6_34] : memref<3x10xf32, #tpu.memory_space<smem>>
    %c0_35 = arith.constant 0 : index
    %c7 = arith.constant 7 : index
    %21 = memref.load %arg2[%c0_35, %c7] : memref<3x10xf32, #tpu.memory_space<smem>>
    %c1_36 = arith.constant 1 : index
    %c7_37 = arith.constant 7 : index
    %22 = memref.load %arg2[%c1_36, %c7_37] : memref<3x10xf32, #tpu.memory_space<smem>>
    %c2_38 = arith.constant 2 : index
    %c7_39 = arith.constant 7 : index
    %23 = memref.load %arg2[%c2_38, %c7_39] : memref<3x10xf32, #tpu.memory_space<smem>>
    %c0_40 = arith.constant 0 : index
    %c8 = arith.constant 8 : index
    %24 = memref.load %arg2[%c0_40, %c8] : memref<3x10xf32, #tpu.memory_space<smem>>
    %c1_41 = arith.constant 1 : index
    %c8_42 = arith.constant 8 : index
    %25 = memref.load %arg2[%c1_41, %c8_42] : memref<3x10xf32, #tpu.memory_space<smem>>
    %c2_43 = arith.constant 2 : index
    %c8_44 = arith.constant 8 : index
    %26 = memref.load %arg2[%c2_43, %c8_44] : memref<3x10xf32, #tpu.memory_space<smem>>
    %c0_45 = arith.constant 0 : index
    %c9 = arith.constant 9 : index
    %27 = memref.load %arg2[%c0_45, %c9] : memref<3x10xf32, #tpu.memory_space<smem>>
    %c1_46 = arith.constant 1 : index
    %c9_47 = arith.constant 9 : index
    %28 = memref.load %arg2[%c1_46, %c9_47] : memref<3x10xf32, #tpu.memory_space<smem>>
    %c2_48 = arith.constant 2 : index
    %c9_49 = arith.constant 9 : index
    %29 = memref.load %arg2[%c2_48, %c9_49] : memref<3x10xf32, #tpu.memory_space<smem>>
    %c0_50 = arith.constant 0 : index
    %30 = memref.load %arg3[%c0_50] : memref<10xf32, #tpu.memory_space<smem>>
    %c1_51 = arith.constant 1 : index
    %31 = memref.load %arg3[%c1_51] : memref<10xf32, #tpu.memory_space<smem>>
    %c2_52 = arith.constant 2 : index
    %32 = memref.load %arg3[%c2_52] : memref<10xf32, #tpu.memory_space<smem>>
    %c3_53 = arith.constant 3 : index
    %33 = memref.load %arg3[%c3_53] : memref<10xf32, #tpu.memory_space<smem>>
    %c4_54 = arith.constant 4 : index
    %34 = memref.load %arg3[%c4_54] : memref<10xf32, #tpu.memory_space<smem>>
    %c5_55 = arith.constant 5 : index
    %35 = memref.load %arg3[%c5_55] : memref<10xf32, #tpu.memory_space<smem>>
    %c6_56 = arith.constant 6 : index
    %36 = memref.load %arg3[%c6_56] : memref<10xf32, #tpu.memory_space<smem>>
    %c7_57 = arith.constant 7 : index
    %37 = memref.load %arg3[%c7_57] : memref<10xf32, #tpu.memory_space<smem>>
    %c8_58 = arith.constant 8 : index
    %38 = memref.load %arg3[%c8_58] : memref<10xf32, #tpu.memory_space<smem>>
    %c9_59 = arith.constant 9 : index
    %39 = memref.load %arg3[%c9_59] : memref<10xf32, #tpu.memory_space<smem>>
    %c0_60 = arith.constant 0 : index
    %c0_61 = arith.constant 0 : index
    %c0_62 = arith.constant 0 : index
    %40 = vector.load %arg1[%c0_60, %c0_61, %c0_62] : memref<3x8x128xf32, #tpu.memory_space<vmem>>, vector<1x8x128xf32>
    %41 = vector.shape_cast %40 : vector<1x8x128xf32> to vector<8x128xf32>
    %c1_63 = arith.constant 1 : index
    %c0_64 = arith.constant 0 : index
    %c0_65 = arith.constant 0 : index
    %42 = vector.load %arg1[%c1_63, %c0_64, %c0_65] : memref<3x8x128xf32, #tpu.memory_space<vmem>>, vector<1x8x128xf32>
    %43 = vector.shape_cast %42 : vector<1x8x128xf32> to vector<8x128xf32>
    %c2_66 = arith.constant 2 : index
    %c0_67 = arith.constant 0 : index
    %c0_68 = arith.constant 0 : index
    %44 = vector.load %arg1[%c2_66, %c0_67, %c0_68] : memref<3x8x128xf32, #tpu.memory_space<vmem>>, vector<1x8x128xf32>
    %45 = vector.shape_cast %44 : vector<1x8x128xf32> to vector<8x128xf32>
    %46 = vector.broadcast %0 : f32 to vector<8x128xf32>
    %47 = arith.mulf %41, %46 : vector<8x128xf32>
    %48 = vector.broadcast %30 : f32 to vector<8x128xf32>
    %49 = arith.addf %47, %48 : vector<8x128xf32>
    %50 = vector.broadcast %1 : f32 to vector<8x128xf32>
    %51 = arith.mulf %43, %50 : vector<8x128xf32>
    %52 = arith.addf %49, %51 : vector<8x128xf32>
    %53 = vector.broadcast %2 : f32 to vector<8x128xf32>
    %54 = arith.mulf %45, %53 : vector<8x128xf32>
    %55 = arith.addf %52, %54 : vector<8x128xf32>
    %56 = arith.mulf %55, %55 : vector<8x128xf32>
    %cst = arith.constant 0.0356774069 : f32
    %57 = vector.broadcast %cst : f32 to vector<8x128xf32>
    %58 = arith.mulf %57, %56 : vector<8x128xf32>
    %cst_69 = arith.constant 0.797884583 : f32
    %59 = vector.broadcast %cst_69 : f32 to vector<8x128xf32>
    %60 = arith.addf %59, %58 : vector<8x128xf32>
    %61 = arith.mulf %55, %60 : vector<8x128xf32>
    %62 = math.tanh %61 : vector<8x128xf32>
    %cst_70 = arith.constant 5.000000e-01 : f32
    %63 = vector.broadcast %cst_70 : f32 to vector<8x128xf32>
    %64 = arith.mulf %63, %55 : vector<8x128xf32>
    %cst_71 = arith.constant 1.000000e+00 : f32
    %65 = vector.broadcast %cst_71 : f32 to vector<8x128xf32>
    %66 = arith.addf %62, %65 : vector<8x128xf32>
    %67 = arith.mulf %64, %66 : vector<8x128xf32>
    %c0_72 = arith.constant 0 : index
    %c0_73 = arith.constant 0 : index
    %c0_74 = arith.constant 0 : index
    %68 = vector.load %arg4[%c0_72, %c0_73, %c0_74] : memref<10x8x128xf32, #tpu.memory_space<vmem>>, vector<1x8x128xf32>
    %69 = vector.shape_cast %68 : vector<1x8x128xf32> to vector<8x128xf32>
    %70 = vector.shape_cast %67 : vector<8x128xf32> to vector<1x8x128xf32>
    tpu.vector_store %arg4[%c0_72, %c0_73, %c0_74], %70 {strides = array<i32>} : memref<10x8x128xf32, #tpu.memory_space<vmem>>, vector<1x8x128xf32>,
    %71 = vector.broadcast %3 : f32 to vector<8x128xf32>
    %72 = arith.mulf %41, %71 : vector<8x128xf32>
    %73 = vector.broadcast %31 : f32 to vector<8x128xf32>
    %74 = arith.addf %72, %73 : vector<8x128xf32>
    %75 = vector.broadcast %4 : f32 to vector<8x128xf32>
    %76 = arith.mulf %43, %75 : vector<8x128xf32>
    %77 = arith.addf %74, %76 : vector<8x128xf32>
    %78 = vector.broadcast %5 : f32 to vector<8x128xf32>
    %79 = arith.mulf %45, %78 : vector<8x128xf32>
    %80 = arith.addf %77, %79 : vector<8x128xf32>
    %81 = arith.mulf %80, %80 : vector<8x128xf32>
    %cst_75 = arith.constant 0.0356774069 : f32
    %82 = vector.broadcast %cst_75 : f32 to vector<8x128xf32>
    %83 = arith.mulf %82, %81 : vector<8x128xf32>
    %cst_76 = arith.constant 0.797884583 : f32
    %84 = vector.broadcast %cst_76 : f32 to vector<8x128xf32>
    %85 = arith.addf %84, %83 : vector<8x128xf32>
    %86 = arith.mulf %80, %85 : vector<8x128xf32>
    %87 = math.tanh %86 : vector<8x128xf32>
    %cst_77 = arith.constant 5.000000e-01 : f32
    %88 = vector.broadcast %cst_77 : f32 to vector<8x128xf32>
    %89 = arith.mulf %88, %80 : vector<8x128xf32>
    %cst_78 = arith.constant 1.000000e+00 : f32
    %90 = vector.broadcast %cst_78 : f32 to vector<8x128xf32>
    %91 = arith.addf %87, %90 : vector<8x128xf32>
    %92 = arith.mulf %89, %91 : vector<8x128xf32>
    %c1_79 = arith.constant 1 : index
    %c0_80 = arith.constant 0 : index
    %c0_81 = arith.constant 0 : index
    %93 = vector.load %arg4[%c1_79, %c0_80, %c0_81] : memref<10x8x128xf32, #tpu.memory_space<vmem>>, vector<1x8x128xf32>
    %94 = vector.shape_cast %93 : vector<1x8x128xf32> to vector<8x128xf32>
    %95 = vector.shape_cast %92 : vector<8x128xf32> to vector<1x8x128xf32>
    tpu.vector_store %arg4[%c1_79, %c0_80, %c0_81], %95 {strides = array<i32>} : memref<10x8x128xf32, #tpu.memory_space<vmem>>, vector<1x8x128xf32>,
    %96 = vector.broadcast %6 : f32 to vector<8x128xf32>
    %97 = arith.mulf %41, %96 : vector<8x128xf32>
    %98 = vector.broadcast %32 : f32 to vector<8x128xf32>
    %99 = arith.addf %97, %98 : vector<8x128xf32>
    %100 = vector.broadcast %7 : f32 to vector<8x128xf32>
    %101 = arith.mulf %43, %100 : vector<8x128xf32>
    %102 = arith.addf %99, %101 : vector<8x128xf32>
    %103 = vector.broadcast %8 : f32 to vector<8x128xf32>
    %104 = arith.mulf %45, %103 : vector<8x128xf32>
    %105 = arith.addf %102, %104 : vector<8x128xf32>
    %106 = arith.mulf %105, %105 : vector<8x128xf32>
    %cst_82 = arith.constant 0.0356774069 : f32
    %107 = vector.broadcast %cst_82 : f32 to vector<8x128xf32>
    %108 = arith.mulf %107, %106 : vector<8x128xf32>
    %cst_83 = arith.constant 0.797884583 : f32
    %109 = vector.broadcast %cst_83 : f32 to vector<8x128xf32>
    %110 = arith.addf %109, %108 : vector<8x128xf32>
    %111 = arith.mulf %105, %110 : vector<8x128xf32>
    %112 = math.tanh %111 : vector<8x128xf32>
    %cst_84 = arith.constant 5.000000e-01 : f32
    %113 = vector.broadcast %cst_84 : f32 to vector<8x128xf32>
    %114 = arith.mulf %113, %105 : vector<8x128xf32>
    %cst_85 = arith.constant 1.000000e+00 : f32
    %115 = vector.broadcast %cst_85 : f32 to vector<8x128xf32>
    %116 = arith.addf %112, %115 : vector<8x128xf32>
    %117 = arith.mulf %114, %116 : vector<8x128xf32>
    %c2_86 = arith.constant 2 : index
    %c0_87 = arith.constant 0 : index
    %c0_88 = arith.constant 0 : index
    %118 = vector.load %arg4[%c2_86, %c0_87, %c0_88] : memref<10x8x128xf32, #tpu.memory_space<vmem>>, vector<1x8x128xf32>
    %119 = vector.shape_cast %118 : vector<1x8x128xf32> to vector<8x128xf32>
    %120 = vector.shape_cast %117 : vector<8x128xf32> to vector<1x8x128xf32>
    tpu.vector_store %arg4[%c2_86, %c0_87, %c0_88], %120 {strides = array<i32>} : memref<10x8x128xf32, #tpu.memory_space<vmem>>, vector<1x8x128xf32>,
    %121 = vector.broadcast %9 : f32 to vector<8x128xf32>
    %122 = arith.mulf %41, %121 : vector<8x128xf32>
    %123 = vector.broadcast %33 : f32 to vector<8x128xf32>
    %124 = arith.addf %122, %123 : vector<8x128xf32>
    %125 = vector.broadcast %10 : f32 to vector<8x128xf32>
    %126 = arith.mulf %43, %125 : vector<8x128xf32>
    %127 = arith.addf %124, %126 : vector<8x128xf32>
    %128 = vector.broadcast %11 : f32 to vector<8x128xf32>
    %129 = arith.mulf %45, %128 : vector<8x128xf32>
    %130 = arith.addf %127, %129 : vector<8x128xf32>
    %131 = arith.mulf %130, %130 : vector<8x128xf32>
    %cst_89 = arith.constant 0.0356774069 : f32
    %132 = vector.broadcast %cst_89 : f32 to vector<8x128xf32>
    %133 = arith.mulf %132, %131 : vector<8x128xf32>
    %cst_90 = arith.constant 0.797884583 : f32
    %134 = vector.broadcast %cst_90 : f32 to vector<8x128xf32>
    %135 = arith.addf %134, %133 : vector<8x128xf32>
    %136 = arith.mulf %130, %135 : vector<8x128xf32>
    %137 = math.tanh %136 : vector<8x128xf32>
    %cst_91 = arith.constant 5.000000e-01 : f32
    %138 = vector.broadcast %cst_91 : f32 to vector<8x128xf32>
    %139 = arith.mulf %138, %130 : vector<8x128xf32>
    %cst_92 = arith.constant 1.000000e+00 : f32
    %140 = vector.broadcast %cst_92 : f32 to vector<8x128xf32>
    %141 = arith.addf %137, %140 : vector<8x128xf32>
    %142 = arith.mulf %139, %141 : vector<8x128xf32>
    %c3_93 = arith.constant 3 : index
    %c0_94 = arith.constant 0 : index
    %c0_95 = arith.constant 0 : index
    %143 = vector.load %arg4[%c3_93, %c0_94, %c0_95] : memref<10x8x128xf32, #tpu.memory_space<vmem>>, vector<1x8x128xf32>
    %144 = vector.shape_cast %143 : vector<1x8x128xf32> to vector<8x128xf32>
    %145 = vector.shape_cast %142 : vector<8x128xf32> to vector<1x8x128xf32>
    tpu.vector_store %arg4[%c3_93, %c0_94, %c0_95], %145 {strides = array<i32>} : memref<10x8x128xf32, #tpu.memory_space<vmem>>, vector<1x8x128xf32>,
    %146 = vector.broadcast %12 : f32 to vector<8x128xf32>
    %147 = arith.mulf %41, %146 : vector<8x128xf32>
    %148 = vector.broadcast %34 : f32 to vector<8x128xf32>
    %149 = arith.addf %147, %148 : vector<8x128xf32>
    %150 = vector.broadcast %13 : f32 to vector<8x128xf32>
    %151 = arith.mulf %43, %150 : vector<8x128xf32>
    %152 = arith.addf %149, %151 : vector<8x128xf32>
    %153 = vector.broadcast %14 : f32 to vector<8x128xf32>
    %154 = arith.mulf %45, %153 : vector<8x128xf32>
    %155 = arith.addf %152, %154 : vector<8x128xf32>
    %156 = arith.mulf %155, %155 : vector<8x128xf32>
    %cst_96 = arith.constant 0.0356774069 : f32
    %157 = vector.broadcast %cst_96 : f32 to vector<8x128xf32>
    %158 = arith.mulf %157, %156 : vector<8x128xf32>
    %cst_97 = arith.constant 0.797884583 : f32
    %159 = vector.broadcast %cst_97 : f32 to vector<8x128xf32>
    %160 = arith.addf %159, %158 : vector<8x128xf32>
    %161 = arith.mulf %155, %160 : vector<8x128xf32>
    %162 = math.tanh %161 : vector<8x128xf32>
    %cst_98 = arith.constant 5.000000e-01 : f32
    %163 = vector.broadcast %cst_98 : f32 to vector<8x128xf32>
    %164 = arith.mulf %163, %155 : vector<8x128xf32>
    %cst_99 = arith.constant 1.000000e+00 : f32
    %165 = vector.broadcast %cst_99 : f32 to vector<8x128xf32>
    %166 = arith.addf %162, %165 : vector<8x128xf32>
    %167 = arith.mulf %164, %166 : vector<8x128xf32>
    %c4_100 = arith.constant 4 : index
    %c0_101 = arith.constant 0 : index
    %c0_102 = arith.constant 0 : index
    %168 = vector.load %arg4[%c4_100, %c0_101, %c0_102] : memref<10x8x128xf32, #tpu.memory_space<vmem>>, vector<1x8x128xf32>
    %169 = vector.shape_cast %168 : vector<1x8x128xf32> to vector<8x128xf32>
    %170 = vector.shape_cast %167 : vector<8x128xf32> to vector<1x8x128xf32>
    tpu.vector_store %arg4[%c4_100, %c0_101, %c0_102], %170 {strides = array<i32>} : memref<10x8x128xf32, #tpu.memory_space<vmem>>, vector<1x8x128xf32>,
    %171 = vector.broadcast %15 : f32 to vector<8x128xf32>
    %172 = arith.mulf %41, %171 : vector<8x128xf32>
    %173 = vector.broadcast %35 : f32 to vector<8x128xf32>
    %174 = arith.addf %172, %173 : vector<8x128xf32>
    %175 = vector.broadcast %16 : f32 to vector<8x128xf32>
    %176 = arith.mulf %43, %175 : vector<8x128xf32>
    %177 = arith.addf %174, %176 : vector<8x128xf32>
    %178 = vector.broadcast %17 : f32 to vector<8x128xf32>
    %179 = arith.mulf %45, %178 : vector<8x128xf32>
    %180 = arith.addf %177, %179 : vector<8x128xf32>
    %181 = arith.mulf %180, %180 : vector<8x128xf32>
    %cst_103 = arith.constant 0.0356774069 : f32
    %182 = vector.broadcast %cst_103 : f32 to vector<8x128xf32>
    %183 = arith.mulf %182, %181 : vector<8x128xf32>
    %cst_104 = arith.constant 0.797884583 : f32
    %184 = vector.broadcast %cst_104 : f32 to vector<8x128xf32>
    %185 = arith.addf %184, %183 : vector<8x128xf32>
    %186 = arith.mulf %180, %185 : vector<8x128xf32>
    %187 = math.tanh %186 : vector<8x128xf32>
    %cst_105 = arith.constant 5.000000e-01 : f32
    %188 = vector.broadcast %cst_105 : f32 to vector<8x128xf32>
    %189 = arith.mulf %188, %180 : vector<8x128xf32>
    %cst_106 = arith.constant 1.000000e+00 : f32
    %190 = vector.broadcast %cst_106 : f32 to vector<8x128xf32>
    %191 = arith.addf %187, %190 : vector<8x128xf32>
    %192 = arith.mulf %189, %191 : vector<8x128xf32>
    %c5_107 = arith.constant 5 : index
    %c0_108 = arith.constant 0 : index
    %c0_109 = arith.constant 0 : index
    %193 = vector.load %arg4[%c5_107, %c0_108, %c0_109] : memref<10x8x128xf32, #tpu.memory_space<vmem>>, vector<1x8x128xf32>
    %194 = vector.shape_cast %193 : vector<1x8x128xf32> to vector<8x128xf32>
    %195 = vector.shape_cast %192 : vector<8x128xf32> to vector<1x8x128xf32>
    tpu.vector_store %arg4[%c5_107, %c0_108, %c0_109], %195 {strides = array<i32>} : memref<10x8x128xf32, #tpu.memory_space<vmem>>, vector<1x8x128xf32>,
    %196 = vector.broadcast %18 : f32 to vector<8x128xf32>
    %197 = arith.mulf %41, %196 : vector<8x128xf32>
    %198 = vector.broadcast %36 : f32 to vector<8x128xf32>
    %199 = arith.addf %197, %198 : vector<8x128xf32>
    %200 = vector.broadcast %19 : f32 to vector<8x128xf32>
    %201 = arith.mulf %43, %200 : vector<8x128xf32>
    %202 = arith.addf %199, %201 : vector<8x128xf32>
    %203 = vector.broadcast %20 : f32 to vector<8x128xf32>
    %204 = arith.mulf %45, %203 : vector<8x128xf32>
    %205 = arith.addf %202, %204 : vector<8x128xf32>
    %206 = arith.mulf %205, %205 : vector<8x128xf32>
    %cst_110 = arith.constant 0.0356774069 : f32
    %207 = vector.broadcast %cst_110 : f32 to vector<8x128xf32>
    %208 = arith.mulf %207, %206 : vector<8x128xf32>
    %cst_111 = arith.constant 0.797884583 : f32
    %209 = vector.broadcast %cst_111 : f32 to vector<8x128xf32>
    %210 = arith.addf %209, %208 : vector<8x128xf32>
    %211 = arith.mulf %205, %210 : vector<8x128xf32>
    %212 = math.tanh %211 : vector<8x128xf32>
    %cst_112 = arith.constant 5.000000e-01 : f32
    %213 = vector.broadcast %cst_112 : f32 to vector<8x128xf32>
    %214 = arith.mulf %213, %205 : vector<8x128xf32>
    %cst_113 = arith.constant 1.000000e+00 : f32
    %215 = vector.broadcast %cst_113 : f32 to vector<8x128xf32>
    %216 = arith.addf %212, %215 : vector<8x128xf32>
    %217 = arith.mulf %214, %216 : vector<8x128xf32>
    %c6_114 = arith.constant 6 : index
    %c0_115 = arith.constant 0 : index
    %c0_116 = arith.constant 0 : index
    %218 = vector.load %arg4[%c6_114, %c0_115, %c0_116] : memref<10x8x128xf32, #tpu.memory_space<vmem>>, vector<1x8x128xf32>
    %219 = vector.shape_cast %218 : vector<1x8x128xf32> to vector<8x128xf32>
    %220 = vector.shape_cast %217 : vector<8x128xf32> to vector<1x8x128xf32>
    tpu.vector_store %arg4[%c6_114, %c0_115, %c0_116], %220 {strides = array<i32>} : memref<10x8x128xf32, #tpu.memory_space<vmem>>, vector<1x8x128xf32>,
    %221 = vector.broadcast %21 : f32 to vector<8x128xf32>
    %222 = arith.mulf %41, %221 : vector<8x128xf32>
    %223 = vector.broadcast %37 : f32 to vector<8x128xf32>
    %224 = arith.addf %222, %223 : vector<8x128xf32>
    %225 = vector.broadcast %22 : f32 to vector<8x128xf32>
    %226 = arith.mulf %43, %225 : vector<8x128xf32>
    %227 = arith.addf %224, %226 : vector<8x128xf32>
    %228 = vector.broadcast %23 : f32 to vector<8x128xf32>
    %229 = arith.mulf %45, %228 : vector<8x128xf32>
    %230 = arith.addf %227, %229 : vector<8x128xf32>
    %231 = arith.mulf %230, %230 : vector<8x128xf32>
    %cst_117 = arith.constant 0.0356774069 : f32
    %232 = vector.broadcast %cst_117 : f32 to vector<8x128xf32>
    %233 = arith.mulf %232, %231 : vector<8x128xf32>
    %cst_118 = arith.constant 0.797884583 : f32
    %234 = vector.broadcast %cst_118 : f32 to vector<8x128xf32>
    %235 = arith.addf %234, %233 : vector<8x128xf32>
    %236 = arith.mulf %230, %235 : vector<8x128xf32>
    %237 = math.tanh %236 : vector<8x128xf32>
    %cst_119 = arith.constant 5.000000e-01 : f32
    %238 = vector.broadcast %cst_119 : f32 to vector<8x128xf32>
    %239 = arith.mulf %238, %230 : vector<8x128xf32>
    %cst_120 = arith.constant 1.000000e+00 : f32
    %240 = vector.broadcast %cst_120 : f32 to vector<8x128xf32>
    %241 = arith.addf %237, %240 : vector<8x128xf32>
    %242 = arith.mulf %239, %241 : vector<8x128xf32>
    %c7_121 = arith.constant 7 : index
    %c0_122 = arith.constant 0 : index
    %c0_123 = arith.constant 0 : index
    %243 = vector.load %arg4[%c7_121, %c0_122, %c0_123] : memref<10x8x128xf32, #tpu.memory_space<vmem>>, vector<1x8x128xf32>
    %244 = vector.shape_cast %243 : vector<1x8x128xf32> to vector<8x128xf32>
    %245 = vector.shape_cast %242 : vector<8x128xf32> to vector<1x8x128xf32>
    tpu.vector_store %arg4[%c7_121, %c0_122, %c0_123], %245 {strides = array<i32>} : memref<10x8x128xf32, #tpu.memory_space<vmem>>, vector<1x8x128xf32>,
    %246 = vector.broadcast %24 : f32 to vector<8x128xf32>
    %247 = arith.mulf %41, %246 : vector<8x128xf32>
    %248 = vector.broadcast %38 : f32 to vector<8x128xf32>
    %249 = arith.addf %247, %248 : vector<8x128xf32>
    %250 = vector.broadcast %25 : f32 to vector<8x128xf32>
    %251 = arith.mulf %43, %250 : vector<8x128xf32>
    %252 = arith.addf %249, %251 : vector<8x128xf32>
    %253 = vector.broadcast %26 : f32 to vector<8x128xf32>
    %254 = arith.mulf %45, %253 : vector<8x128xf32>
    %255 = arith.addf %252, %254 : vector<8x128xf32>
    %256 = arith.mulf %255, %255 : vector<8x128xf32>
    %cst_124 = arith.constant 0.0356774069 : f32
    %257 = vector.broadcast %cst_124 : f32 to vector<8x128xf32>
    %258 = arith.mulf %257, %256 : vector<8x128xf32>
    %cst_125 = arith.constant 0.797884583 : f32
    %259 = vector.broadcast %cst_125 : f32 to vector<8x128xf32>
    %260 = arith.addf %259, %258 : vector<8x128xf32>
    %261 = arith.mulf %255, %260 : vector<8x128xf32>
    %262 = math.tanh %261 : vector<8x128xf32>
    %cst_126 = arith.constant 5.000000e-01 : f32
    %263 = vector.broadcast %cst_126 : f32 to vector<8x128xf32>
    %264 = arith.mulf %263, %255 : vector<8x128xf32>
    %cst_127 = arith.constant 1.000000e+00 : f32
    %265 = vector.broadcast %cst_127 : f32 to vector<8x128xf32>
    %266 = arith.addf %262, %265 : vector<8x128xf32>
    %267 = arith.mulf %264, %266 : vector<8x128xf32>
    %c8_128 = arith.constant 8 : index
    %c0_129 = arith.constant 0 : index
    %c0_130 = arith.constant 0 : index
    %268 = vector.load %arg4[%c8_128, %c0_129, %c0_130] : memref<10x8x128xf32, #tpu.memory_space<vmem>>, vector<1x8x128xf32>
    %269 = vector.shape_cast %268 : vector<1x8x128xf32> to vector<8x128xf32>
    %270 = vector.shape_cast %267 : vector<8x128xf32> to vector<1x8x128xf32>
    tpu.vector_store %arg4[%c8_128, %c0_129, %c0_130], %270 {strides = array<i32>} : memref<10x8x128xf32, #tpu.memory_space<vmem>>, vector<1x8x128xf32>,
    %271 = vector.broadcast %27 : f32 to vector<8x128xf32>
    %272 = arith.mulf %41, %271 : vector<8x128xf32>
    %273 = vector.broadcast %39 : f32 to vector<8x128xf32>
    %274 = arith.addf %272, %273 : vector<8x128xf32>
    %275 = vector.broadcast %28 : f32 to vector<8x128xf32>
    %276 = arith.mulf %43, %275 : vector<8x128xf32>
    %277 = arith.addf %274, %276 : vector<8x128xf32>
    %278 = vector.broadcast %29 : f32 to vector<8x128xf32>
    %279 = arith.mulf %45, %278 : vector<8x128xf32>
    %280 = arith.addf %277, %279 : vector<8x128xf32>
    %281 = arith.mulf %280, %280 : vector<8x128xf32>
    %cst_131 = arith.constant 0.0356774069 : f32
    %282 = vector.broadcast %cst_131 : f32 to vector<8x128xf32>
    %283 = arith.mulf %282, %281 : vector<8x128xf32>
    %cst_132 = arith.constant 0.797884583 : f32
    %284 = vector.broadcast %cst_132 : f32 to vector<8x128xf32>
    %285 = arith.addf %284, %283 : vector<8x128xf32>
    %286 = arith.mulf %280, %285 : vector<8x128xf32>
    %287 = math.tanh %286 : vector<8x128xf32>
    %cst_133 = arith.constant 5.000000e-01 : f32
    %288 = vector.broadcast %cst_133 : f32 to vector<8x128xf32>
    %289 = arith.mulf %288, %280 : vector<8x128xf32>
    %cst_134 = arith.constant 1.000000e+00 : f32
    %290 = vector.broadcast %cst_134 : f32 to vector<8x128xf32>
    %291 = arith.addf %287, %290 : vector<8x128xf32>
    %292 = arith.mulf %289, %291 : vector<8x128xf32>
    %c9_135 = arith.constant 9 : index
    %c0_136 = arith.constant 0 : index
    %c0_137 = arith.constant 0 : index
    %293 = vector.load %arg4[%c9_135, %c0_136, %c0_137] : memref<10x8x128xf32, #tpu.memory_space<vmem>>, vector<1x8x128xf32>
    %294 = vector.shape_cast %293 : vector<1x8x128xf32> to vector<8x128xf32>
    %295 = vector.shape_cast %292 : vector<8x128xf32> to vector<1x8x128xf32>
    tpu.vector_store %arg4[%c9_135, %c0_136, %c0_137], %295 {strides = array<i32>} : memref<10x8x128xf32, #tpu.memory_space<vmem>>, vector<1x8x128xf32>,
    return
  }
  func.func @transform_0(%arg0: i32) -> (i32, i32, i32) {
    %c0_i32 = arith.constant 0 : i32
    %c0_i32_0 = arith.constant 0 : i32
    %c0_i32_1 = arith.constant 0 : i32
    return %c0_i32, %arg0, %c0_i32_0 : i32, i32, i32
  }
  func.func @transform_1(%arg0: i32) -> (i32, i32) {
    %c0_i32 = arith.constant 0 : i32
    %c0_i32_0 = arith.constant 0 : i32
    %c0_i32_1 = arith.constant 0 : i32
    return %c0_i32, %c0_i32_0 : i32, i32
  }
  func.func @transform_2(%arg0: i32) -> i32 {
    %c0_i32 = arith.constant 0 : i32
    %c0_i32_0 = arith.constant 0 : i32
    return %c0_i32 : i32
  }
  func.func @transform_3(%arg0: i32) -> (i32, i32, i32) {
    %c0_i32 = arith.constant 0 : i32
    %c0_i32_0 = arith.constant 0 : i32
    %c0_i32_1 = arith.constant 0 : i32
    return %c0_i32, %arg0, %c0_i32_0 : i32, i32, i32
  }
}

</mosaic_0001>

<bundles_post_ra>
// kernel: model_forward.1
= control target key start
LH: loop header
LB: loop body
LE: loop exit
PB: predicated region body
PF: predicated region fallthrough
CT: control target
= control target key end

     0   :  { %8 = vsyncpa [#allocation3], 0  ;;  %s605_s0 = inlined_call_operand.vmem [shape: f32[3,8,128], index: 0, kind: input, shape index: {}]   ;;  %s606_s1 = inlined_call_operand.vmem [shape: f32[3,10], index: 1, kind: input, shape index: {}]   ;;  %s607_s2 = inlined_call_operand.vmem [shape: f32[10], index: 2, kind: input, shape index: {}]   ;;  %s608_s3 = inlined_call_operand.vmem [shape: f32[10,8,128], index: 3, kind: output, shape index: {}]  }
   0x1   :  { %s17_s14 = sshll.u32 %s606_s1, 4  ;;  %s18_s14 = int_to_ptr.vmem [resolvable:$true] %s17_s14 }
   0x2   :  { %9 = vsyncpa [#allocation5], 0  ;;  %s26_s17 = sshll.u32 %s607_s2, 4  ;;  %s388_s18 = smov [#allocation2]   ;;  %s27_s17 = int_to_ptr.vmem [resolvable:$true] %s26_s17 }
   0x3   :  { %20 = dma.vmem_to_smem %s18_s14, 64, %s388_s18, [#allocation3]  }
   0x4   :  { %s389_s19 = smov [#allocation4]  }
   0x5   :  { %29 = dma.vmem_to_smem %s27_s17, 16, %s389_s19, [#allocation5]  }
   0x6   :  { %384 = dma.done.wait [#allocation3], 64  }
   0x7   :  { %385 = vsyncadd [#allocation3], 4294967232 }
   0x8   :  { %386 = dma.done.wait [#allocation5], 16  }
   0x9   :  { %387 = vsyncadd [#allocation5], 4294967280 }
   0xa   :  { %38 = sfence }
   0xb   :  { %s39_s20 = sld [smem:[#allocation2]]  ;;  %v419_v0 = vld [vmem:[%s605_s0] sm:$0xff]  ;;  %v424_v1 = vld [vmem:[%s605_s0 + $0x8] sm:$0xff]  ;;  %v429_v3 = vld [vmem:[%s605_s0 + $0x10] sm:$0xff] }
   0xc   :  { %s289_s21 = sld [smem:[#allocation2 + $0x80]] }
   0xd   :  { %s290_s22 = sld [smem:[#allocation2 + $0x100]] }
   0xe   :  { %s69_s1 = sld [smem:[#allocation4]] }
   0xf   :  { %s291_s2 = sld [smem:[#allocation2 + $0x1]] }
  0x10   :  { %s292_s27 = sld [smem:[#allocation2 + $0x81]] }
  0x11   :  { %v84_v2 = vstv %s39_s20  ;;  %s293_s28 = sld [smem:[#allocation2 + $0x101]] }
  0x12   :  { %v85_v4 = vmul.f32 %v84_v2, %v419_v0  ;;  %v88_v5 = vstv %s289_s21  ;;  %s318_s4 = sld [smem:[#allocation4 + $0x1]] }
  0x13   :  { %v89_v6 = vmul.f32 %v424_v1, %v88_v5  ;;  %v91_v7 = vstv %s290_s22  ;;  %s294_s5 = sld [smem:[#allocation2 + $0x2]] }
  0x14   :  { %v86_v8 = vstv %s69_s1  ;;  %s295_s6 = sld [smem:[#allocation2 + $0x82]]  ;;  %v92_v10 = vmul.f32 %v429_v3, %v91_v7 }
  0x15   :  { %v87_v9 = vadd.f32 %v86_v8, %v85_v4  ;;  %v103_v11 = vstv %s291_s2  ;;  %s296_s7 = sld [smem:[#allocation2 + $0x102]] }
  0x16   :  { %v104_v12 = vmul.f32 %v103_v11, %v419_v0  ;;  %v107_v13 = vstv %s292_s27  ;;  %s319_s0 = sld [smem:[#allocation4 + $0x2]] }
  0x17   :  { %v90_v14 = vadd.f32 %v89_v6, %v87_v9  ;;  %v108_v15 = vmul.f32 %v424_v1, %v107_v13  ;;  %v110_v16 = vstv %s293_s28  ;;  %s297_s8 = sld [smem:[#allocation2 + $0x3]] }
  0x18   :  { %v105_v17 = vstv %s318_s4  ;;  %s436_s9 = sld [smem:[#allocation2 + $0x83]]  ;;  %v111_v20 = vmul.f32 %v429_v3, %v110_v16 }
  0x19   :  { %v438_v18 = vadd.f32 %v92_v10, %v90_v14  ;;  %v106_v19 = vadd.f32 %v105_v17, %v104_v12  ;;  %v123_v21 = vstv %s294_s5  ;;  %s441_s10 = sld [smem:[#allocation2 + $0x103]] }
  0x1a   :  { %v124_v22 = vmul.f32 %v123_v21, %v419_v0  ;;  %v127_v23 = vstv %s295_s6  ;;  %s320_s11 = sld [smem:[#allocation4 + $0x3]] }
  0x1b   :  { %v94_v24 = vmul.f32 %v438_v18, %v438_v18  ;;  %v109_v25 = vadd.f32 %v108_v15, %v106_v19  ;;  %v128_v26 = vmul.f32 %v424_v1, %v127_v23  ;;  %s447_s12 = sld [smem:[#allocation2 + $0x4]]  ;;  %v130_v28 = vstv %s296_s7 }
  0x1c   :  { %v125_v27 = vstv %s319_s0  ;;  %s449_s13 = sld [smem:[#allocation2 + $0x84]]  ;;  %v131_v32 = vmul.f32 %v429_v3, %v130_v28  ;;  %v99_v5 = vmul.f32 0.5, %v438_v18 }
  0x1d   :  { %v95_v29 = vmul.f32 0.035677407, %v94_v24  ;;  %v451_v30 = vadd.f32 %v111_v20, %v109_v25  ;;  %v126_v31 = vadd.f32 %v125_v27, %v124_v22  ;;  %s454_s14 = sld [smem:[#allocation2 + $0x104]]  ;;  %v143_v33 = vstv %s297_s8 }
  0x1e   :  { %v147_v34 = vstv %s436_s9  ;;  %s457_s15 = sld [smem:[#allocation4 + $0x4]]  ;;  %v144_v38 = vmul.f32 %v143_v33, %v419_v0 }
  0x1f   :  { %v96_v35 = vadd.f32 0.7978846, %v95_v29  ;;  %v113_v36 = vmul.f32 %v451_v30, %v451_v30  ;;  %v129_v37 = vadd.f32 %v128_v26, %v126_v31  ;;  %s461_s16 = sld [smem:[#allocation2 + $0x5]]  ;;  %v148_v40 = vmul.f32 %v424_v1, %v147_v34 }
  0x20   :  { %v145_v39 = vstv %s320_s11  ;;  %v150_v41 = vstv %s441_s10  ;;  %s466_s17 = sld [smem:[#allocation2 + $0x85]]  ;;  %v118_v22 = vmul.f32 0.5, %v451_v30 }
  0x21   :  { %v97_v42 = vmul.f32 %v96_v35, %v438_v18  ;;  %v114_v43 = vmul.f32 0.035677407, %v113_v36  ;;  %v469_v44 = vadd.f32 %v131_v32, %v129_v37  ;;  %s471_s18 = sld [smem:[#allocation2 + $0x105]]  ;;  %v146_v45 = vadd.f32 %v145_v39, %v144_v38 }
  0x22   :  { %v151_v46 = vmul.f32 %v429_v3, %v150_v41  ;;  %v163_v47 = vstv %s447_s12  ;;  %v167_v48 = vstv %s449_s13  ;;  %s476_s19 = sld [smem:[#allocation4 + $0x5]] }
  0x23   :  { %340 = vtanh.f32 %v97_v42  ;;  %v115_v49 = vadd.f32 0.7978846, %v114_v43  ;;  %v133_v50 = vmul.f32 %v469_v44, %v469_v44  ;;  %s480_s20 = sld [smem:[#allocation2 + $0x6]]  ;;  %v149_v51 = vadd.f32 %v148_v40, %v146_v45 }
  0x24   :  { %v164_v52 = vmul.f32 %v163_v47, %v419_v0  ;;  %v165_v53 = vstv %s457_s15  ;;  %v168_v54 = vmul.f32 %v424_v1, %v167_v48  ;;  %s485_s21 = sld [smem:[#allocation2 + $0x86]]  ;;  %v170_v57 = vstv %s454_s14 }
  0x25   :  { %v116_v55 = vmul.f32 %v115_v49, %v451_v30  ;;  %v134_v56 = vmul.f32 0.035677407, %v133_v50  ;;  %v183_v58 = vstv %s461_s16  ;;  %s490_s22 = sld [smem:[#allocation2 + $0x106]]  ;;  %v492_v59 = vadd.f32 %v151_v46, %v149_v51 }
  0x26   :  { %v166_v60 = vadd.f32 %v165_v53, %v164_v52  ;;  %v171_v61 = vmul.f32 %v429_v3, %v170_v57  ;;  %v184_v62 = vmul.f32 %v183_v58, %v419_v0  ;;  %s496_s1 = sld [smem:[#allocation4 + $0x6]]  ;;  %v187_v2 = vstv %s466_s17 }
  0x27   :  { %342 = vtanh.f32 %v116_v55  ;;  %v135_v63 = vadd.f32 0.7978846, %v134_v56  ;;  %v190_v4 = vstv %s471_s18  ;;  %s500_s23 = sld [smem:[#allocation2 + $0x7]]  ;;  %v153_v6 = vmul.f32 %v492_v59, %v492_v59 }
  0x28   :  { %v169_v7 = vadd.f32 %v168_v54, %v166_v60  ;;  %v185_v8 = vstv %s476_s19  ;;  %s506_s24 = sld [smem:[#allocation2 + $0x87]]  ;;  %v188_v12 = vmul.f32 %v424_v1, %v187_v2  ;;  %v191_v13 = vmul.f32 %v429_v3, %v190_v4 }
  0x29   :  { %v341_v9 = vpop.eup %340  ;;  %v136_v10 = vmul.f32 %v135_v63, %v469_v44  ;;  %v186_v11 = vadd.f32 %v185_v8, %v184_v62  ;;  %s511_s2 = sld [smem:[#allocation2 + $0x107]]  ;;  %v154_v15 = vmul.f32 0.035677407, %v153_v6  ;;  %v203_v17 = vstv %s480_s20 }
  0x2a   :  { %v100_v14 = vadd.f32 1.0, %v341_v9  ;;  %v513_v16 = vadd.f32 %v171_v61, %v169_v7  ;;  %s516_s25 = sld [smem:[#allocation4 + $0x7]]  ;;  %v204_v19 = vmul.f32 %v203_v17, %v419_v0  ;;  %v207_v20 = vstv %s485_s21 }
  0x2b   :  { %344 = vtanh.f32 %v136_v10  ;;  %v189_v18 = vadd.f32 %v188_v12, %v186_v11  ;;  %s520_s26 = sld [smem:[#allocation2 + $0x8]]  ;;  %v155_v23 = vadd.f32 0.7978846, %v154_v15  ;;  %v208_v28 = vmul.f32 %v424_v1, %v207_v20 }
  0x2c   :  { %v101_v21 = vmul.f32 %v100_v14, %v99_v5  ;;  %v173_v24 = vmul.f32 %v513_v16, %v513_v16  ;;  %s525_s27 = sld [smem:[#allocation2 + $0x88]]  ;;  %v205_v27 = vstv %s496_s1  ;;  %v210_v29 = vstv %s490_s22 }
  0x2d   :  { %v343_v25 = vpop.eup %342  ;;  %v527_v26 = vadd.f32 %v191_v13, %v189_v18  ;;  %s532_s28 = sld [smem:[#allocation2 + $0x108]]  ;;  %v156_v31 = vmul.f32 %v155_v23, %v492_v59  ;;  %v206_v33 = vadd.f32 %v205_v27, %v204_v19  ;;  %v138_v34 = vmul.f32 0.5, %v469_v44 }
  0x2e   :  { %102 = vst [vmem:[%s608_s3] sm:$0xff] %v101_v21  ;;  %v119_v30 = vadd.f32 1.0, %v343_v25  ;;  %v174_v32 = vmul.f32 0.035677407, %v173_v24  ;;  %s538_s4 = sld [smem:[#allocation4 + $0x8]]  ;;  %v211_v36 = vmul.f32 %v429_v3, %v210_v29  ;;  %v223_v37 = vstv %s500_s23 }
  0x2f   :  { %v193_v35 = vmul.f32 %v527_v26, %v527_v26  ;;  %346 = vtanh.f32 %v156_v31  ;;  %v209_v40 = vadd.f32 %v208_v28, %v206_v33  ;;  %s545_s5 = sld [smem:[#allocation2 + $0x9]]  ;;  %v224_v43 = vmul.f32 %v223_v37, %v419_v0 }
  0x30   :  { %v120_v38 = vmul.f32 %v119_v30, %v118_v22  ;;  %v175_v39 = vadd.f32 0.7978846, %v174_v32  ;;  %v225_v45 = vstv %s516_s25  ;;  %v227_v44 = vstv %s506_s24  ;;  %s550_s6 = sld [smem:[#allocation2 + $0x89]] }
  0x31   :  { %v345_v41 = vpop.eup %344  ;;  %v194_v42 = vmul.f32 0.035677407, %v193_v35  ;;  %v212_v48 = vadd.f32 %v211_v36, %v209_v40  ;;  %v228_v49 = vmul.f32 %v424_v1, %v227_v44  ;;  %s557_s8 = sld [smem:[#allocation4 + $0x9]]  ;;  %v226_v51 = vadd.f32 %v225_v45, %v224_v43 }
  0x32   :  { %329 = vst [vmem:[%s608_s3 + $0x8] sm:$0xff] %v120_v38  ;;  %v139_v46 = vadd.f32 1.0, %v345_v41  ;;  %v176_v47 = vmul.f32 %v175_v39, %v513_v16  ;;  %v230_v52 = vstv %s511_s2  ;;  %v243_v53 = vstv %s520_s26  ;;  %s562_s9 = sld [smem:[#allocation2 + $0x109]] }
  0x33   :  { %v195_v50 = vadd.f32 0.7978846, %v194_v42  ;;  %v158_v55 = vmul.f32 0.5, %v492_v59  ;;  %v213_v56 = vmul.f32 %v212_v48, %v212_v48  ;;  %v229_v58 = vadd.f32 %v228_v49, %v226_v51 }
  0x34   :  { %v140_v54 = vmul.f32 %v139_v46, %v138_v34  ;;  %348 = vtanh.f32 %v176_v47  ;;  %v231_v60 = vmul.f32 %v429_v3, %v230_v52  ;;  %v244_v61 = vmul.f32 %v243_v53, %v419_v0 }
  0x35   :  { %v196_v57 = vmul.f32 %v195_v50, %v527_v26  ;;  %v347_v62 = vpop.eup %346  ;;  %v214_v63 = vmul.f32 0.035677407, %v213_v56  ;;  %v245_v2 = vstv %s538_s4  ;;  %v247_v59 = vstv %s525_s27 }
  0x36   :  { %330 = vst [vmem:[%s608_s3 + $0x10] sm:$0xff] %v140_v54  ;;  %v250_v4 = vstv %s532_s28  ;;  %v159_v5 = vadd.f32 1.0, %v347_v62  ;;  %v232_v6 = vadd.f32 %v231_v60, %v229_v58  ;;  %v246_v7 = vadd.f32 %v245_v2, %v244_v61 }
  0x37   :  { %350 = vtanh.f32 %v196_v57  ;;  %v215_v8 = vadd.f32 0.7978846, %v214_v63  ;;  %v248_v9 = vmul.f32 %v424_v1, %v247_v59  ;;  %v251_v10 = vmul.f32 %v429_v3, %v250_v4 }
  0x38   :  { %v263_v11 = vstv %s545_s5  ;;  %v160_v12 = vmul.f32 %v159_v5, %v158_v55  ;;  %v178_v13 = vmul.f32 0.5, %v513_v16  ;;  %v233_v14 = vmul.f32 %v232_v6, %v232_v6 }
  0x39   :  { %v264_v15 = vmul.f32 %v263_v11, %v419_v0  ;;  %v216_v18 = vmul.f32 %v215_v8, %v212_v48  ;;  %v249_v19 = vadd.f32 %v248_v9, %v246_v7  ;;  %v265_v20 = vstv %s557_s8 }
  0x3a   :  { %v349_v17 = vpop.eup %348  ;;  %v267_v21 = vstv %s550_s6  ;;  %331 = vst [vmem:[%s608_s3 + $0x18] sm:$0xff] %v160_v12  ;;  %v234_v23 = vmul.f32 0.035677407, %v233_v14  ;;  %v198_v16 = vmul.f32 0.5, %v527_v26  ;;  %v270_v28 = vstv %s562_s9 }
  0x3b   :  { %v179_v22 = vadd.f32 1.0, %v349_v17  ;;  %v266_v24 = vadd.f32 %v265_v20, %v264_v15  ;;  %v268_v25 = vmul.f32 %v424_v1, %v267_v21  ;;  %352 = vtanh.f32 %v216_v18 }
  0x3c   :  { %v252_v27 = vadd.f32 %v251_v10, %v249_v19  ;;  %v235_v30 = vadd.f32 0.7978846, %v234_v23  ;;  %v271_v32 = vmul.f32 %v429_v3, %v270_v28  ;;  %v218_v26 = vmul.f32 0.5, %v212_v48 }
  0x3d   :  { %v351_v0 = vpop.eup %350  ;;  %v180_v29 = vmul.f32 %v179_v22, %v178_v13  ;;  %v269_v31 = vadd.f32 %v268_v25, %v266_v24  ;;  %v238_v44 = vmul.f32 0.5, %v232_v6 }
  0x3e   :  { %v199_v33 = vadd.f32 1.0, %v351_v0  ;;  %v253_v34 = vmul.f32 %v252_v27, %v252_v27  ;;  %v236_v35 = vmul.f32 %v235_v30, %v232_v6  ;;  %v258_v50 = vmul.f32 0.5, %v252_v27 }
  0x3f   :  { %332 = vst [vmem:[%s608_s3 + $0x20] sm:$0xff] %v180_v29  ;;  %v272_v36 = vadd.f32 %v271_v32, %v269_v31 }
  0x40   :  { %v200_v1 = vmul.f32 %v199_v33, %v198_v16  ;;  %v254_v37 = vmul.f32 0.035677407, %v253_v34  ;;  %354 = vtanh.f32 %v236_v35 }
  0x41   :  { %v273_v38 = vmul.f32 %v272_v36, %v272_v36  ;;  %v353_v39 = vpop.eup %352  ;;  %v278_v53 = vmul.f32 0.5, %v272_v36 }
  0x42   :  { %333 = vst [vmem:[%s608_s3 + $0x28] sm:$0xff] %v200_v1  ;;  %v255_v40 = vadd.f32 0.7978846, %v254_v37  ;;  %v219_v3 = vadd.f32 1.0, %v353_v39 }
  0x43   :  { %v274_v41 = vmul.f32 0.035677407, %v273_v38 }
  0x44   :  { %v256_v42 = vmul.f32 %v255_v40, %v252_v27  ;;  %v220_v43 = vmul.f32 %v219_v3, %v218_v26 }
  0x45   :  { %v275_v45 = vadd.f32 0.7978846, %v274_v41 }
  0x46   :  { %356 = vtanh.f32 %v256_v42  ;;  %v355_v46 = vpop.eup %354  ;;  %334 = vst [vmem:[%s608_s3 + $0x30] sm:$0xff] %v220_v43 }
  0x47   :  { %v276_v47 = vmul.f32 %v275_v45, %v272_v36  ;;  %v239_v48 = vadd.f32 1.0, %v355_v46 }
  0x49   :  { %358 = vtanh.f32 %v276_v47  ;;  %v240_v49 = vmul.f32 %v239_v48, %v238_v44 }
  0x4b   :  { %335 = vst [vmem:[%s608_s3 + $0x38] sm:$0xff] %v240_v49 }
  0x4c   :  { %v357_v51 = vpop.eup %356 }
  0x4d   :  { %v259_v52 = vadd.f32 1.0, %v357_v51 }
  0x4f   :  { %v359_v54 = vpop.eup %358  ;;  %v260_v55 = vmul.f32 %v259_v52, %v258_v50 }
  0x50   :  { %v279_v56 = vadd.f32 1.0, %v359_v54 }
  0x51   :  { %336 = vst [vmem:[%s608_s3 + $0x40] sm:$0xff] %v260_v55 }
  0x52   :  { %v280_v57 = vmul.f32 %v279_v56, %v278_v53 }
  0x54   :  { %337 = vst [vmem:[%s608_s3 + $0x48] sm:$0xff] %v280_v57 }
  0x55   :  { %287 = vsyncpa [#allocation3], 1 }
  0x56   :  { %288 = vsyncpa [#allocation5], 1 }

</bundles_post_ra>
